<compile_context>
chip_gen: v7x
topology: tpu7x:2x2x1
jax: 0.10.0
libtpu: 0.0.40
codegen_flags: <defaults>
</compile_context>

<pallas_src>
import jax
import jax.numpy as jnp
from jax.experimental import pallas as pl
from jax.experimental.pallas import tpu as pltpu

_NEG = -1e30  # pre-ReLU mask for out-of-range conv (position, branch) columns


def _round_up(v, m):
    return ((v + m - 1) // m) * m


# ---------------------------------------------------------------------------
# Kernel
# ---------------------------------------------------------------------------
def _make_kernel(hparams, w_layout, b_layout):
    K = hparams['conv_num_kernel']
    A = hparams['num_api']
    F = hparams['feature_dim']
    L = hparams['text_len']
    ws_tuple = tuple(hparams['conv_kernel_size_tuple'])
    n = len(ws_tuple)
    nK = n * K
    P = L - min(ws_tuple) + 1        # pooled positions (common, padded) per branch

    def kernel(x_ref, w_ref, b_ref, out_ref):
        x2 = x_ref[...]              # (Bt, L*E), lane-dense
        bias = b_ref[...]            # small bias slab, one VMEM load

        def wslab(name):             # static, 8-row-aligned slab slices
            r0, nr, nc = w_layout[name]
            return w_ref[r0:r0 + nr, 0:nc]

        def bslab(name):
            r, nc = b_layout[name]
            return bias[r:r + 1, 0:nc]

        # --- Both conv branches (+bias, +ReLU) as ONE block-Toeplitz dot. ---
        # Column layout: col = p*(n*K) + c*K + k  (position-major).
        conv = jnp.dot(x2, wslab('toe'), preferred_element_type=jnp.float32)
        conv = jnp.maximum(conv + bslab('conv'), 0.0)            # (Bt, P*n*K)

        # Max-pool over conv positions: P static lane slices of width n*K.
        pooled = conv[:, 0:nK]
        for p in range(1, P):
            pooled = jnp.maximum(pooled, conv[:, p * nK:(p + 1) * nK])
        # pooled[:, c*K + k] == branch c, channel k (matches the 'ef' regather)

        # --- Fused sc_fcl + fic_fc: one dot produces [u_sc | u_t]. ----------
        uv = (jnp.dot(pooled, wslab('ef'), preferred_element_type=jnp.float32)
              + bslab('ef'))
        u_sc = uv[:, 0:A]            # (Bt, A)
        u_t = uv[:, A:A + F]         # (Bt, F)

        # --- Fused u_mm + fic_mlp (input-independent terms hoisted to host).
        tm = jnp.dot(u_t, wslab('t'), preferred_element_type=jnp.float32)  # (Bt, A+1)
        u_mm = tm[:, 0:A]
        u_mlp = jnp.tanh(tm[:, A:A + 1] + bslab('mlp'))                    # (Bt, A)

        # u_fic = tanh(fic_fcl(cat(u_mm, u_mlp)))  (weight pre-split halves).
        u_fic = jnp.tanh(
            jnp.dot(u_mm, wslab('ficl_a'), preferred_element_type=jnp.float32)
            + jnp.dot(u_mlp, wslab('ficl_b'), preferred_element_type=jnp.float32)
            + bslab('ficl'))

        # task = api_task_layer(fusion_layer(cat(u_sc, u_fic))); both layers
        # are linear, composed into single weights on the host.
        task = (jnp.dot(u_sc, wslab('sc_task'), preferred_element_type=jnp.float32)
                + jnp.dot(u_fic, wslab('fic_task'), preferred_element_type=jnp.float32)
                + bslab('task'))
        out_ref[...] = task

    return kernel


# ---------------------------------------------------------------------------
# Host-side parameter preparation (hoisting, fusion, slab packing)
# ---------------------------------------------------------------------------
def _pack_rows(mats, width, row_align=8):
    """Stack 2-D matrices into one slab; each segment starts 8-row aligned."""
    layout, pieces, r = {}, [], 0
    for name, m in mats.items():
        nr, nc = m.shape
        layout[name] = (r, nr, nc)
        pad_r = (-nr) % row_align
        pieces.append(jnp.pad(m, ((0, pad_r), (0, width - nc))))
        r += nr + pad_r
    return jnp.concatenate(pieces, axis=0), layout


def prepare_params(params, hparams, compute_dtype=jnp.float32):
    """Precompute all input-independent terms and pack weights/biases into two
    contiguous VMEM slabs (kernel inputs: x + weight slab + bias slab)."""
    E = hparams['embedding_size']
    K = hparams['conv_num_kernel']
    A = hparams['num_api']
    F = hparams['feature_dim']
    L = hparams['text_len']
    ws_tuple = tuple(hparams['conv_kernel_size_tuple'])
    n = len(ws_tuple)
    nK = n * K
    P = L - min(ws_tuple) + 1
    C = P * nK

    weights, biases = {}, {}

    # Block-Toeplitz conv weight (L*E, P*n*K).  Column p*nK + c*K + k produces
    # branch c, channel k, position p of the conv.  Positions past a branch's
    # valid range keep zero weights and a -1e30 bias (masked pre-ReLU).
    toe = jnp.zeros((L * E, C), jnp.float32)
    conv_bias = jnp.full((1, C), _NEG, jnp.float32)
    for c, ws in enumerate(ws_tuple):
        wc = params[f'wc{c}']            # (K, E, ws), PyTorch Conv1d layout
        bc = params[f'bc{c}']            # (K,)
        lout = L - ws + 1
        for p in range(lout):
            col = p * nK + c * K
            conv_bias = conv_bias.at[0, col:col + K].set(bc)
            for j in range(ws):
                row = (p + j) * E
                toe = toe.at[row:row + E, col:col + K].set(wc[:, :, j].T)
    weights['toe'] = toe
    biases['conv'] = conv_bias

    # sc_fcl + fic_fc fused.  pooled features are ordered c*K + k while PyTorch
    # flattens as d = k*n + c, so weight rows c::n are regathered per branch.
    wscT = params['wsc'].T               # (D, A)
    wficT = params['wfic'].T             # (D, F)
    W_sc = jnp.concatenate([wscT[c::n] for c in range(n)], axis=0)
    W_fic = jnp.concatenate([wficT[c::n] for c in range(n)], axis=0)
    weights['ef'] = jnp.concatenate([W_sc, W_fic], axis=1)                 # (D, A+F)
    biases['ef'] = jnp.concatenate([params['bsc'], params['bfic']])[None, :]

    # u_mm + fic_mlp fused.  fic_mlp = Linear(2F->F) -> Linear(F->1) -> Tanh
    # (no nonlinearity in between), so it decomposes linearly:
    #   mlp(b, a) = tanh(u_t[b] @ v + (w2 @ W1b @ emb)[a] + w2 @ b1 + b2)
    emb = params['emb']                  # (F, A)
    w1, b1 = params['w1'], params['b1']
    w2, b2 = params['w2'], params['b2']
    v = w1[:, :F].T @ w2.T               # (F, 1), acts on u_t
    weights['t'] = jnp.concatenate([emb, v], axis=1)                       # (F, A+1)
    biases['mlp'] = w2 @ (w1[:, F:] @ emb) + jnp.sum(b1 * w2[0]) + b2      # (1, A)

    # fic_fcl, split into the u_mm half and the u_mlp half.
    weights['ficl_a'] = params['wficl'][:, :A].T
    weights['ficl_b'] = params['wficl'][:, A:].T
    biases['ficl'] = params['bficl'][None, :]

    # fusion_layer composed with api_task_layer (both linear, no activation in
    # between), split into the u_sc half and the u_fic half.
    wtT = params['wtask'].T
    weights['sc_task'] = params['wfus'][:, :A].T @ wtT
    weights['fic_task'] = params['wfus'][:, A:].T @ wtT
    biases['task'] = params['bfus'][None, :] @ wtT + params['btask'][None, :]

    width = max(max(m.shape[1] for m in weights.values()),
                max(b.shape[1] for b in biases.values()))
    w_slab, w_layout = _pack_rows(weights, width)
    w_slab = w_slab.astype(compute_dtype)

    # Bias slab: one f32 row per bias, padded to the slab width and 8 rows.
    b_layout, rows = {}, []
    for i, (name, b) in enumerate(biases.items()):
        b_layout[name] = (i, b.shape[1])
        rows.append(jnp.pad(b, ((0, 0), (0, width - b.shape[1]))))
    pad = (-len(rows)) % 8
    if pad:
        rows.append(jnp.zeros((pad, width), jnp.float32))
    b_slab = jnp.concatenate(rows, axis=0).astype(jnp.float32)

    return dict(w_slab=w_slab, b_slab=b_slab, w_layout=w_layout,
                b_layout=b_layout, compute_dtype=compute_dtype)


# ---------------------------------------------------------------------------
# Pallas wrapper
# ---------------------------------------------------------------------------
def scnet_forward(x, kernel_params, hparams, *, batch_tile=None):
    B, L, E = x.shape
    A = hparams['num_api']
    K = hparams['conv_num_kernel']
    F = hparams['feature_dim']
    ws_tuple = tuple(hparams['conv_kernel_size_tuple'])
    n = len(ws_tuple)
    P = L - min(ws_tuple) + 1
    LE = L * E
    C = P * n * K

    w_slab = kernel_params['w_slab']
    b_slab = kernel_params['b_slab']
    compute_dtype = kernel_params['compute_dtype']
    # bf16 packs 2 rows/sublane -> keep batch blocks 16-row aligned there.
    align = 16 if jnp.dtype(compute_dtype).itemsize == 2 else 8

    if batch_tile is None:
        if B <= 2 * align:
            batch_tile = _round_up(B, align)
        else:
            # >=2 grid steps so both v7x TensorCores get work; cap the tile so
            # live VMEM (~3 KiB / batch element) stays far below the 32 MiB
            # default scoped VMEM on every generation (v5e/v6e/v7x).
            batch_tile = min(2048, _round_up((B + 1) // 2, align))
    else:
        batch_tile = _round_up(max(int(batch_tile), align), align)

    B_pad = _round_up(B, batch_tile)
    grid = (B_pad // batch_tile,)

    # Lane-dense input: (B, L*E) so each batch row fills full vreg lanes and
    # the x DMA is contiguous.  Ragged batches are zero-padded (padded rows
    # produce finite garbage that is sliced away below).
    x2 = x.reshape(B, LE).astype(compute_dtype)
    if B_pad != B:
        x2 = jnp.pad(x2, ((0, B_pad - B), (0, 0)))

    kernel = _make_kernel(hparams, kernel_params['w_layout'],
                          kernel_params['b_layout'])

    flops = 2 * B_pad * (LE * C + (n * K) * (A + F) + F * (A + 1) + 4 * A * A)
    cost = pl.CostEstimate(
        flops=int(flops),
        transcendentals=int(2 * B_pad * A),
        bytes_accessed=int(B_pad * LE * x2.dtype.itemsize + B_pad * A * 4
                           + w_slab.size * w_slab.dtype.itemsize
                           + b_slab.size * 4))

    out = pl.pallas_call(
        kernel,
        out_shape=jax.ShapeDtypeStruct((B_pad, A), jnp.float32),
        grid=grid,
        in_specs=[
            pl.BlockSpec((batch_tile, LE), lambda i: (i, 0)),
            pl.BlockSpec(w_slab.shape, lambda i: (0, 0)),   # weights stay VMEM-resident
            pl.BlockSpec(b_slab.shape, lambda i: (0, 0)),
        ],
        out_specs=pl.BlockSpec((batch_tile, A), lambda i: (i, 0)),
        compiler_params=pltpu.CompilerParams(dimension_semantics=("parallel",)),
        cost_estimate=cost,
    )(x2, w_slab, b_slab)
    # TODO(synk): optionally emit a lane-padded / transposed output for
    # consumers that accept it (avoids 16-lane masked stores, mostly on v5e).
    return out if B_pad == B else out[:B]


# ---------------------------------------------------------------------------
# Parameter init (PyTorch layouts) and pure-JAX reference for correctness
# ---------------------------------------------------------------------------
def init_params(key, hparams):
    E = hparams['embedding_size']
    K = hparams['conv_num_kernel']
    A = hparams['num_api']
    F = hparams['feature_dim']
    ws_tuple = tuple(hparams['conv_kernel_size_tuple'])
    n = len(ws_tuple)
    D = K * n

    keys = jax.random.split(key, 2 * n + 20)
    ki = iter(range(len(keys)))

    def rnd(shape, scale=0.1):
        return (scale * jax.random.normal(keys[next(ki)], shape)).astype(jnp.float32)

    params = {}
    for c, ws in enumerate(ws_tuple):
        params[f'wc{c}'] = rnd((K, E, ws))      # PyTorch Conv1d weight layout
        params[f'bc{c}'] = rnd((K,))
    params.update(
        wsc=rnd((A, D)), bsc=rnd((A,)),
        wfic=rnd((F, D)), bfic=rnd((F,)),
        emb=jax.random.uniform(keys[next(ki)], (F, A), dtype=jnp.float32),
        w1=rnd((F, 2 * F)), b1=rnd((F,)),
        w2=rnd((1, F)), b2=rnd((1,)),
        wficl=rnd((A, 2 * A)), bficl=rnd((A,)),
        wfus=rnd((A, 2 * A)), bfus=rnd((A,)),
        wtask=rnd((A, A)), btask=rnd((A,)),
    )
    return params


def scnet_reference(x, params, hparams):
    """Pure-JAX transcription of the PyTorch SCNet.forward (correctness check)."""
    L = hparams['text_len']
    A = hparams['num_api']
    ws_tuple = tuple(hparams['conv_kernel_size_tuple'])

    x_trans = jnp.transpose(x, (0, 2, 1))           # (B, E, L)
    pooled = []
    for c, ws in enumerate(ws_tuple):
        w = params[f'wc{c}']                        # (K, E, ws)
        b = params[f'bc{c}']                        # (K,)
        lout = L - ws + 1
        conv = sum(jnp.einsum('bet,ke->bkt', x_trans[:, :, j:j + lout], w[:, :, j])
                   for j in range(ws)) + b[None, :, None]
        conv = jnp.maximum(conv, 0.0)
        pooled.append(jnp.max(conv, axis=2, keepdims=True))   # (B, K, 1)
    e = jnp.concatenate(pooled, axis=2)
    e = e.reshape(e.shape[0], -1)                   # (B, K*n), index = k*n + c
    u_sc = e @ params['wsc'].T + params['bsc']
    u_t = e @ params['wfic'].T + params['bfic']
    emb = params['emb']
    u_mm = u_t @ emb
    rows = []
    for bi in range(x.shape[0]):
        z = jnp.concatenate([jnp.tile(u_t[bi][None, :], (A, 1)), emb.T], axis=1)
        h = z @ params['w1'].T + params['b1']
        s = h @ params['w2'].T + params['b2']
        rows.append(jnp.tanh(s)[:, 0])
    u_mlp = jnp.stack(rows, axis=0)
    u_fic = jnp.tanh(jnp.concatenate([u_mm, u_mlp], axis=1) @ params['wficl'].T
                     + params['bficl'])
    u_mmf = jnp.concatenate([u_sc, u_fic], axis=1) @ params['wfus'].T + params['bfus']
    return u_mmf @ params['wtask'].T + params['btask']


if __name__ == "__main__":
    hparams = dict(
        text_len=8,
        embedding_size=32,
        conv_num_kernel=16,
        conv_kernel_size_tuple=(2, 3),
        num_api=16,
        feature_dim=8,
    )
    key = jax.random.PRNGKey(0)
    kx, kx2, kp = jax.random.split(key, 3)

    params = init_params(kp, hparams)
    # Full-f32 matmuls for the host-side precompute and the reference model.
    with jax.default_matmul_precision("float32"):
        kernel_params = prepare_params(params, hparams)

    # Test 1: small batch, single grid step.
    B = 2
    x = jax.random.normal(
        kx, (B, hparams['text_len'], hparams['embedding_size']), dtype=jnp.float32)
    with jax.default_matmul_precision("float32"):
        ref = scnet_reference(x, params, hparams)
    out = jax.block_until_ready(scnet_forward(x, kernel_params, hparams))
    assert out.shape == (B, hparams['num_api'])
    assert bool(jnp.all(jnp.isfinite(out)))
    err = float(jnp.max(jnp.abs(out - jax.block_until_ready(ref))))
    assert err < 5e-3, f"kernel/reference mismatch (B=2): max abs err {err}"

    # Test 2: ragged batch -> host-side pad + 2-step parallel grid.
    B2 = 20
    x2 = jax.random.normal(
        kx2, (B2, hparams['text_len'], hparams['embedding_size']), dtype=jnp.float32)
    with jax.default_matmul_precision("float32"):
        ref2 = scnet_reference(x2, params, hparams)
    out2 = jax.block_until_ready(scnet_forward(x2, kernel_params, hparams))
    assert out2.shape == (B2, hparams['num_api'])
    err2 = float(jnp.max(jnp.abs(out2 - jax.block_until_ready(ref2))))
    assert err2 < 5e-3, f"kernel/reference mismatch (B=20): max abs err {err2}"

    print("KERNEL_OK")
</pallas_src>

<mosaic_0001>
module attributes {stable_mosaic.version = 11 : i64} {
  func.func @kernel(%arg0: i32, %arg1: memref<8x256xf32, #tpu.memory_space<vmem>>, %arg2: memref<360x224xf32, #tpu.memory_space<vmem>>, %arg3: memref<8x224xf32, #tpu.memory_space<vmem>>, %arg4: memref<8x16xf32, #tpu.memory_space<vmem>>) attributes {dimension_semantics = [#tpu.dimension_semantics<parallel>], iteration_bounds = array<i64: 1>, scalar_prefetch = 0 : i64, scratch_operands = 0 : i64, tpu.core_type = #tpu.core_type<tc>, window_params = [{transform_indices = @transform_0, window_bounds = array<i64: 8, 256>}, {pipeline_mode = #tpu.pipeline_mode<synchronous>, transform_indices = @transform_1, window_bounds = array<i64: 360, 224>}, {pipeline_mode = #tpu.pipeline_mode<synchronous>, transform_indices = @transform_2, window_bounds = array<i64: 8, 224>}, {transform_indices = @transform_3, window_bounds = array<i64: 8, 16>}]} {
    %c0 = arith.constant 0 : index
    %c0_0 = arith.constant 0 : index
    %0 = vector.load %arg1[%c0, %c0_0] : memref<8x256xf32, #tpu.memory_space<vmem>>, vector<8x256xf32>
    %c0_1 = arith.constant 0 : index
    %c0_2 = arith.constant 0 : index
    %1 = vector.load %arg3[%c0_1, %c0_2] : memref<8x224xf32, #tpu.memory_space<vmem>>, vector<8x224xf32>
    %c0_3 = arith.constant 0 : index
    %c0_4 = arith.constant 0 : index
    %2 = vector.load %arg2[%c0_3, %c0_4] : memref<360x224xf32, #tpu.memory_space<vmem>>, vector<256x224xf32>
    %cst = arith.constant dense<0.000000e+00> : vector<8x224xf32>
    %3 = tpu.matmul %0, %2, %cst {dimension_numbers = #tpu.dot_dimension_numbers<[1], [0], [0], [1], [0, 0, 1, 1], [], []>} : vector<8x256xf32>, vector<256x224xf32>, vector<8x224xf32> -> vector<8x224xf32>
    %4 = vector.extract_strided_slice %1 {offsets = [0, 0], sizes = [1, 224], strides = [1, 1]} : vector<8x224xf32> to vector<1x224xf32>
    %5 = vector.broadcast %4 : vector<1x224xf32> to vector<8x224xf32>
    %6 = arith.addf %3, %5 : vector<8x224xf32>
    %cst_5 = arith.constant 0.000000e+00 : f32
    %7 = vector.broadcast %cst_5 : f32 to vector<8x224xf32>
    %8 = arith.maximumf %6, %7 : vector<8x224xf32>
    %9 = vector.extract_strided_slice %8 {offsets = [0, 0], sizes = [8, 32], strides = [1, 1]} : vector<8x224xf32> to vector<8x32xf32>
    %10 = vector.extract_strided_slice %8 {offsets = [0, 32], sizes = [8, 32], strides = [1, 1]} : vector<8x224xf32> to vector<8x32xf32>
    %11 = arith.maximumf %9, %10 : vector<8x32xf32>
    %12 = vector.extract_strided_slice %8 {offsets = [0, 64], sizes = [8, 32], strides = [1, 1]} : vector<8x224xf32> to vector<8x32xf32>
    %13 = arith.maximumf %11, %12 : vector<8x32xf32>
    %14 = vector.extract_strided_slice %8 {offsets = [0, 96], sizes = [8, 32], strides = [1, 1]} : vector<8x224xf32> to vector<8x32xf32>
    %15 = arith.maximumf %13, %14 : vector<8x32xf32>
    %16 = vector.extract_strided_slice %8 {offsets = [0, 128], sizes = [8, 32], strides = [1, 1]} : vector<8x224xf32> to vector<8x32xf32>
    %17 = arith.maximumf %15, %16 : vector<8x32xf32>
    %18 = vector.extract_strided_slice %8 {offsets = [0, 160], sizes = [8, 32], strides = [1, 1]} : vector<8x224xf32> to vector<8x32xf32>
    %19 = arith.maximumf %17, %18 : vector<8x32xf32>
    %20 = vector.extract_strided_slice %8 {offsets = [0, 192], sizes = [8, 32], strides = [1, 1]} : vector<8x224xf32> to vector<8x32xf32>
    %21 = arith.maximumf %19, %20 : vector<8x32xf32>
    %c256 = arith.constant 256 : index
    %c0_6 = arith.constant 0 : index
    %22 = vector.load %arg2[%c256, %c0_6] : memref<360x224xf32, #tpu.memory_space<vmem>>, vector<32x24xf32>
    %cst_7 = arith.constant dense<0.000000e+00> : vector<8x24xf32>
    %23 = tpu.matmul %21, %22, %cst_7 {dimension_numbers = #tpu.dot_dimension_numbers<[1], [0], [0], [1], [0, 0, 1, 1], [], []>} : vector<8x32xf32>, vector<32x24xf32>, vector<8x24xf32> -> vector<8x24xf32>
    %24 = vector.extract_strided_slice %1 {offsets = [1, 0], sizes = [1, 24], strides = [1, 1]} : vector<8x224xf32> to vector<1x24xf32>
    %25 = vector.broadcast %24 : vector<1x24xf32> to vector<8x24xf32>
    %26 = arith.addf %23, %25 : vector<8x24xf32>
    %27 = vector.extract_strided_slice %26 {offsets = [0, 0], sizes = [8, 16], strides = [1, 1]} : vector<8x24xf32> to vector<8x16xf32>
    %28 = vector.extract_strided_slice %26 {offsets = [0, 16], sizes = [8, 8], strides = [1, 1]} : vector<8x24xf32> to vector<8x8xf32>
    %c288 = arith.constant 288 : index
    %c0_8 = arith.constant 0 : index
    %29 = vector.load %arg2[%c288, %c0_8] : memref<360x224xf32, #tpu.memory_space<vmem>>, vector<8x17xf32>
    %cst_9 = arith.constant dense<0.000000e+00> : vector<8x17xf32>
    %30 = tpu.matmul %28, %29, %cst_9 {dimension_numbers = #tpu.dot_dimension_numbers<[1], [0], [0], [1], [0, 0, 1, 1], [], []>} : vector<8x8xf32>, vector<8x17xf32>, vector<8x17xf32> -> vector<8x17xf32>
    %31 = vector.extract_strided_slice %30 {offsets = [0, 0], sizes = [8, 16], strides = [1, 1]} : vector<8x17xf32> to vector<8x16xf32>
    %32 = vector.extract_strided_slice %30 {offsets = [0, 16], sizes = [8, 1], strides = [1, 1]} : vector<8x17xf32> to vector<8x1xf32>
    %33 = vector.extract_strided_slice %1 {offsets = [2, 0], sizes = [1, 16], strides = [1, 1]} : vector<8x224xf32> to vector<1x16xf32>
    %34 = vector.broadcast %32 : vector<8x1xf32> to vector<8x16xf32>
    %35 = vector.broadcast %33 : vector<1x16xf32> to vector<8x16xf32>
    %36 = arith.addf %34, %35 : vector<8x16xf32>
    %37 = math.tanh %36 : vector<8x16xf32>
    %c296 = arith.constant 296 : index
    %c0_10 = arith.constant 0 : index
    %38 = vector.load %arg2[%c296, %c0_10] : memref<360x224xf32, #tpu.memory_space<vmem>>, vector<16x16xf32>
    %cst_11 = arith.constant dense<0.000000e+00> : vector<8x16xf32>
    %39 = tpu.matmul %31, %38, %cst_11 {dimension_numbers = #tpu.dot_dimension_numbers<[1], [0], [0], [1], [0, 0, 1, 1], [], []>} : vector<8x16xf32>, vector<16x16xf32>, vector<8x16xf32> -> vector<8x16xf32>
    %c312 = arith.constant 312 : index
    %c0_12 = arith.constant 0 : index
    %40 = vector.load %arg2[%c312, %c0_12] : memref<360x224xf32, #tpu.memory_space<vmem>>, vector<16x16xf32>
    %cst_13 = arith.constant dense<0.000000e+00> : vector<8x16xf32>
    %41 = tpu.matmul %37, %40, %cst_13 {dimension_numbers = #tpu.dot_dimension_numbers<[1], [0], [0], [1], [0, 0, 1, 1], [], []>} : vector<8x16xf32>, vector<16x16xf32>, vector<8x16xf32> -> vector<8x16xf32>
    %42 = arith.addf %39, %41 : vector<8x16xf32>
    %43 = vector.extract_strided_slice %1 {offsets = [3, 0], sizes = [1, 16], strides = [1, 1]} : vector<8x224xf32> to vector<1x16xf32>
    %44 = vector.broadcast %43 : vector<1x16xf32> to vector<8x16xf32>
    %45 = arith.addf %42, %44 : vector<8x16xf32>
    %46 = math.tanh %45 : vector<8x16xf32>
    %c328 = arith.constant 328 : index
    %c0_14 = arith.constant 0 : index
    %47 = vector.load %arg2[%c328, %c0_14] : memref<360x224xf32, #tpu.memory_space<vmem>>, vector<16x16xf32>
    %cst_15 = arith.constant dense<0.000000e+00> : vector<8x16xf32>
    %48 = tpu.matmul %27, %47, %cst_15 {dimension_numbers = #tpu.dot_dimension_numbers<[1], [0], [0], [1], [0, 0, 1, 1], [], []>} : vector<8x16xf32>, vector<16x16xf32>, vector<8x16xf32> -> vector<8x16xf32>
    %c344 = arith.constant 344 : index
    %c0_16 = arith.constant 0 : index
    %49 = vector.load %arg2[%c344, %c0_16] : memref<360x224xf32, #tpu.memory_space<vmem>>, vector<16x16xf32>
    %cst_17 = arith.constant dense<0.000000e+00> : vector<8x16xf32>
    %50 = tpu.matmul %46, %49, %cst_17 {dimension_numbers = #tpu.dot_dimension_numbers<[1], [0], [0], [1], [0, 0, 1, 1], [], []>} : vector<8x16xf32>, vector<16x16xf32>, vector<8x16xf32> -> vector<8x16xf32>
    %51 = arith.addf %48, %50 : vector<8x16xf32>
    %52 = vector.extract_strided_slice %1 {offsets = [4, 0], sizes = [1, 16], strides = [1, 1]} : vector<8x224xf32> to vector<1x16xf32>
    %53 = vector.broadcast %52 : vector<1x16xf32> to vector<8x16xf32>
    %54 = arith.addf %51, %53 : vector<8x16xf32>
    %c0_18 = arith.constant 0 : index
    %c0_19 = arith.constant 0 : index
    %55 = vector.load %arg4[%c0_18, %c0_19] : memref<8x16xf32, #tpu.memory_space<vmem>>, vector<8x16xf32>
    tpu.vector_store %arg4[%c0_18, %c0_19], %54 {strides = array<i32>} : memref<8x16xf32, #tpu.memory_space<vmem>>, vector<8x16xf32>,
    return
  }
  func.func @transform_0(%arg0: i32) -> (i32, i32) {
    %c0_i32 = arith.constant 0 : i32
    %c0_i32_0 = arith.constant 0 : i32
    return %arg0, %c0_i32 : i32, i32
  }
  func.func @transform_1(%arg0: i32) -> (i32, i32) {
    %c0_i32 = arith.constant 0 : i32
    %c0_i32_0 = arith.constant 0 : i32
    %c0_i32_1 = arith.constant 0 : i32
    return %c0_i32, %c0_i32_0 : i32, i32
  }
  func.func @transform_2(%arg0: i32) -> (i32, i32) {
    %c0_i32 = arith.constant 0 : i32
    %c0_i32_0 = arith.constant 0 : i32
    %c0_i32_1 = arith.constant 0 : i32
    return %c0_i32, %c0_i32_0 : i32, i32
  }
  func.func @transform_3(%arg0: i32) -> (i32, i32) {
    %c0_i32 = arith.constant 0 : i32
    %c0_i32_0 = arith.constant 0 : i32
    return %arg0, %c0_i32 : i32, i32
  }
}

</mosaic_0001>

<bundles_post_ra>
// kernel: tpu_custom_call.1
= control target key start
LH: loop header
LB: loop body
LE: loop exit
PB: predicated region body
PF: predicated region fallthrough
CT: control target
= control target key end

     0   :  { %s1193_s0 = inlined_call_operand.vmem [shape: f32[8,256], index: 0, kind: input, shape index: {}]   ;;  %s1194_s1 = inlined_call_operand.vmem [shape: f32[360,224], index: 1, kind: input, shape index: {}]   ;;  %s1195_s2 = inlined_call_operand.vmem [shape: f32[8,224], index: 2, kind: input, shape index: {}]   ;;  %s1196_s3 = inlined_call_operand.hbm [shape: f32[8,16], index: 3, kind: output, shape index: {}]  }
   0x1   :  { %v20_v0 = vld [vmem:[%s1194_s1 + $0x8] sm:$0xff]  ;;  %v22_v1 = vld [vmem:[%s1194_s1 + $0x18] sm:$0xff]  ;;  %v19_v2 = vld [vmem:[%s1194_s1] sm:$0xff] }
   0x2   :  { %v751_v3 = vpack.c.bf16 %v22_v1, %v20_v0  ;;  %v21_v4 = vld [vmem:[%s1194_s1 + $0x10] sm:$0xff]  ;;  %v24_v5 = vld [vmem:[%s1194_s1 + $0x28] sm:$0xff]  ;;  %v26_v6 = vld [vmem:[%s1194_s1 + $0x38] sm:$0xff] }
   0x3   :  { %v753_v7 = vpack.c.bf16 %v21_v4, %v19_v2  ;;  %v755_v8 = vpack.c.bf16 %v26_v6, %v24_v5  ;;  %v23_v9 = vld [vmem:[%s1194_s1 + $0x20] sm:$0xff]  ;;  %v25_v10 = vld [vmem:[%s1194_s1 + $0x30] sm:$0xff]  ;;  %v28_v11 = vld [vmem:[%s1194_s1 + $0x48] sm:$0xff] }
   0x4   :  { %752 = vmatprep.subr.bf16.mxu0 %v751_v3  ;;  %v30_v12 = vld [vmem:[%s1194_s1 + $0x58] sm:$0xff]  ;;  %v757_v13 = vpack.c.bf16 %v25_v10, %v23_v9  ;;  %v27_v15 = vld [vmem:[%s1194_s1 + $0x40] sm:$0xff]  ;;  %v29_v16 = vld [vmem:[%s1194_s1 + $0x50] sm:$0xff] }
   0x5   :  { %754 = vmatpush1.bf16.msra.mxu0 %v753_v7  ;;  %v759_v14 = vpack.c.bf16 %v30_v12, %v28_v11  ;;  %v32_v17 = vld [vmem:[%s1194_s1 + $0x68] sm:$0xff]  ;;  %v34_v18 = vld [vmem:[%s1194_s1 + $0x78] sm:$0xff]  ;;  %v761_v19 = vpack.c.bf16 %v29_v16, %v27_v15  ;;  %v31_v21 = vld [vmem:[%s1194_s1 + $0x60] sm:$0xff] }
   0x6   :  { %756 = vmatprep.subr.bf16.mxu0 %v755_v8  ;;  %v763_v20 = vpack.c.bf16 %v34_v18, %v32_v17  ;;  %v33_v22 = vld [vmem:[%s1194_s1 + $0x70] sm:$0xff]  ;;  %v36_v23 = vld [vmem:[%s1194_s1 + $0x88] sm:$0xff]  ;;  %v38_v24 = vld [vmem:[%s1194_s1 + $0x98] sm:$0xff] }
   0x7   :  { %v765_v25 = vpack.c.bf16 %v33_v22, %v31_v21  ;;  %v767_v26 = vpack.c.bf16 %v38_v24, %v36_v23  ;;  %v35_v27 = vld [vmem:[%s1194_s1 + $0x80] sm:$0xff]  ;;  %v37_v28 = vld [vmem:[%s1194_s1 + $0x90] sm:$0xff]  ;;  %v40_v29 = vld [vmem:[%s1194_s1 + $0xa8] sm:$0xff] }
   0x8   :  { %v42_v30 = vld [vmem:[%s1194_s1 + $0xb8] sm:$0xff]  ;;  %v769_v31 = vpack.c.bf16 %v37_v28, %v35_v27  ;;  %v39_v33 = vld [vmem:[%s1194_s1 + $0xa0] sm:$0xff]  ;;  %v41_v34 = vld [vmem:[%s1194_s1 + $0xb0] sm:$0xff] }
   0x9   :  { %758 = vmatpush1.bf16.msra.mxu0 %v757_v13  ;;  %v771_v32 = vpack.c.bf16 %v42_v30, %v40_v29  ;;  %v44_v35 = vld [vmem:[%s1194_s1 + $0xc8] sm:$0xff]  ;;  %v46_v36 = vld [vmem:[%s1194_s1 + $0xd8] sm:$0xff]  ;;  %v773_v37 = vpack.c.bf16 %v41_v34, %v39_v33  ;;  %v43_v39 = vld [vmem:[%s1194_s1 + $0xc0] sm:$0xff] }
   0xa   :  { %760 = vmatprep.subr.bf16.mxu0 %v759_v14  ;;  %v775_v38 = vpack.c.bf16 %v46_v36, %v44_v35  ;;  %v45_v40 = vld [vmem:[%s1194_s1 + $0xd0] sm:$0xff]  ;;  %v16_v41 = vld [vmem:[%s1193_s0 + $0x8] sm:$0xff]  ;;  %v50_v43 = vld [vmem:[%s1194_s1 + $0xf8] sm:$0xff] }
   0xb   :  { %v48_v42 = vld [vmem:[%s1194_s1 + $0xe8] sm:$0xff]  ;;  %155 = vmatprep.mubr.f32.mxu0 %v16_v41 }
   0xd   :  { %762 = vmatpush1.bf16.msra.mxu0 %v761_v19 }
   0xe   :  { %764 = vmatprep.subr.bf16.mxu0 %v763_v20 }
  0x11   :  { %766 = vmatpush1.bf16.msra.mxu0 %v765_v25 }
  0x12   :  { %768 = vmatprep.subr.bf16.mxu0 %v767_v26 }
  0x15   :  { %770 = vmatpush1.bf16.msra.mxu0 %v769_v31 }
  0x16   :  { %772 = vmatprep.subr.bf16.mxu0 %v771_v32 }
  0x17   :  { %8 = vsyncpa [#allocation3], 0  ;;  %v777_v44 = vpack.c.bf16 %v45_v40, %v43_v39  ;;  %v779_v45 = vpack.c.bf16 %v50_v43, %v48_v42  ;;  %v47_v46 = vld [vmem:[%s1194_s1 + $0xe0] sm:$0xff]  ;;  %v49_v47 = vld [vmem:[%s1194_s1 + $0xf0] sm:$0xff]  ;;  %v83_v34 = vlaneseq  ;;  %v871_v43 = vmov 0.0|0.0   ;;  %s872_s19 = smov 32  }
  0x18   :  { %v52_v48 = vld [vmem:[%s1194_s1 + $0x108] sm:$0xff]  ;;  %v54_v49 = vld [vmem:[%s1194_s1 + $0x118] sm:$0xff]  ;;  %v781_v50 = vpack.c.bf16 %v49_v47, %v47_v46  ;;  %v51_v52 = vld [vmem:[%s1194_s1 + $0x100] sm:$0xff]  ;;  %815 = vmatprep.subr.bf16.mxu1 %v871_v43  ;;  %s873_s20 = smov 96   ;;  %vm874_vm0 = vmmov 0   ;;  %s876_s21 = smov 64  }
  0x19   :  { %774 = vmatpush1.bf16.msra.mxu0 %v773_v37  ;;  %v783_v51 = vpack.c.bf16 %v54_v49, %v52_v48  ;;  %v53_v53 = vld [vmem:[%s1194_s1 + $0x110] sm:$0xff]  ;;  %v56_v54 = vld [vmem:[%s1194_s1 + $0x128] sm:$0xff]  ;;  %v58_v55 = vld [vmem:[%s1194_s1 + $0x138] sm:$0xff]  ;;  %v1098_v35 = vshrl.u32 %v83_v34, 7  ;;  %vm195_vm1 = vcmask 261120   ;;  %s878_s24 = smov 112  }
  0x1a   :  { %776 = vmatprep.subr.bf16.mxu0 %v775_v38  ;;  %v785_v56 = vpack.c.bf16 %v53_v53, %v51_v52  ;;  %v787_v57 = vpack.c.bf16 %v58_v55, %v56_v54  ;;  %v55_v58 = vld [vmem:[%s1194_s1 + $0x120] sm:$0xff]  ;;  %v57_v59 = vld [vmem:[%s1194_s1 + $0x130] sm:$0xff]  ;;  %v60_v60 = vld [vmem:[%s1194_s1 + $0x148] sm:$0xff]  ;;  %v875_v53 = vmov 0.0   ;;  %vm273_vm2 = vcmask 64512   ;;  %s879_s14 = smov [#allocation2]  }
  0x1b   :  { %v62_v61 = vld [vmem:[%s1194_s1 + $0x158] sm:$0xff]  ;;  %v789_v62 = vpack.c.bf16 %v57_v59, %v55_v58  ;;  %v59_v0 = vld [vmem:[%s1194_s1 + $0x140] sm:$0xff]  ;;  %v61_v1 = vld [vmem:[%s1194_s1 + $0x150] sm:$0xff]  ;;  %v85_v36 = vsub.s32 0, %v1098_v35  ;;  %715 = vmatprep.mubr.msk.f32.mxu1 %vm874_vm0, %v875_v53  ;;  %vm361_vm3 = vcmask 130048  }
  0x1c   :  { %v791_v63 = vpack.c.bf16 %v62_v61, %v60_v60  ;;  %v64_v2 = vld [vmem:[%s1194_s1 + $0x168] sm:$0xff]  ;;  %v66_v3 = vld [vmem:[%s1194_s1 + $0x178] sm:$0xff]  ;;  %v793_v4 = vpack.c.bf16 %v61_v1, %v59_v0  ;;  %v63_v6 = vld [vmem:[%s1194_s1 + $0x160] sm:$0xff] }
  0x1d   :  { %778 = vmatpush1.bf16.msra.mxu0 %v777_v44  ;;  %v795_v5 = vpack.c.bf16 %v66_v3, %v64_v2  ;;  %v65_v7 = vld [vmem:[%s1194_s1 + $0x170] sm:$0xff]  ;;  %v68_v8 = vld [vmem:[%s1194_s1 + $0x188] sm:$0xff]  ;;  %v70_v9 = vld [vmem:[%s1194_s1 + $0x198] sm:$0xff]  ;;  %v877_v3 = vmov 16  }
  0x1e   :  { %780 = vmatprep.subr.bf16.mxu0 %v779_v45  ;;  %v797_v10 = vpack.c.bf16 %v65_v7, %v63_v6  ;;  %v799_v11 = vpack.c.bf16 %v70_v9, %v68_v8  ;;  %v67_v12 = vld [vmem:[%s1194_s1 + $0x180] sm:$0xff]  ;;  %v69_v13 = vld [vmem:[%s1194_s1 + $0x190] sm:$0xff]  ;;  %v72_v14 = vld [vmem:[%s1194_s1 + $0x1a8] sm:$0xff]  ;;  %842 = vset.pattern.permute.xlu0 %v877_v3 }
  0x1f   :  { %v74_v15 = vld [vmem:[%s1194_s1 + $0x1b8] sm:$0xff]  ;;  %v801_v16 = vpack.c.bf16 %v69_v13, %v67_v12  ;;  %v71_v18 = vld [vmem:[%s1194_s1 + $0x1a0] sm:$0xff]  ;;  %v73_v19 = vld [vmem:[%s1194_s1 + $0x1b0] sm:$0xff] }
  0x20   :  { %v803_v17 = vpack.c.bf16 %v74_v15, %v72_v14  ;;  %v76_v20 = vld [vmem:[%s1194_s1 + $0x1c8] sm:$0xff]  ;;  %v78_v21 = vld [vmem:[%s1194_s1 + $0x1d8] sm:$0xff]  ;;  %v805_v22 = vpack.c.bf16 %v73_v19, %v71_v18  ;;  %v75_v24 = vld [vmem:[%s1194_s1 + $0x1c0] sm:$0xff]  ;;  %v353_v15 = vsub.s32 2, %v1098_v35 }
  0x21   :  { %782 = vmatpush1.bf16.msra.mxu0 %v781_v50  ;;  %v807_v23 = vpack.c.bf16 %v78_v21, %v76_v20  ;;  %v77_v25 = vld [vmem:[%s1194_s1 + $0x1d0] sm:$0xff]  ;;  %v80_v26 = vld [vmem:[%s1194_s1 + $0x1e8] sm:$0xff]  ;;  %v82_v27 = vld [vmem:[%s1194_s1 + $0x1f8] sm:$0xff] }
  0x22   :  { %784 = vmatprep.subr.bf16.mxu0 %v783_v51  ;;  %v809_v28 = vpack.c.bf16 %v77_v25, %v75_v24  ;;  %v811_v29 = vpack.c.bf16 %v82_v27, %v80_v26  ;;  %v79_v30 = vld [vmem:[%s1194_s1 + $0x1e0] sm:$0xff]  ;;  %v81_v31 = vld [vmem:[%s1194_s1 + $0x1f0] sm:$0xff]  ;;  %v18_v38 = vld [vmem:[%s1195_s2 + $0x8] sm:$0xff]  ;;  %v509_v26 = vsub.s32 3, %v1098_v35 }
  0x23   :  { %v813_v32 = vpack.c.bf16 %v81_v31, %v79_v30  ;;  %v15_v33 = vld [vmem:[%s1193_s0] sm:$0xff]  ;;  %v188_v40 = vld [vmem:[%s1194_s1 + $0x210] sm:$0xff]  ;;  %v90_v44 = vrot.slane %v18_v38, %v85_v36  ;;  %s674_s0 = sshll.u32 %s879_s14, 4  ;;  %s675_s0 = int_to_ptr.vmem [resolvable:$true] %s674_s0 }
  0x24   :  { %v1104_v37 = vld [vmem:[%s1195_s2] sm:$0xff]  ;;  %v190_v47 = vld [vmem:[%s1194_s1 + $0x230] sm:$0xff]  ;;  %p852_p1 = scmp.lt.s32.totalorder %s675_s0, %s675_s0 }
  0x25   :  { %786 = vmatpush1.bf16.msra.mxu0 %v785_v56  ;;  %v187_v39 = vld [vmem:[%s1194_s1 + $0x200] sm:$0xff]  ;;  %v86_v41 = vrot.slane %v1104_v37, %v85_v36  ;;  %v359_v12 = vld [vmem:[%s1194_s1 + $0x270] sm:$0xff] }
  0x26   :  { %788 = vmatprep.subr.bf16.mxu0 %v787_v57  ;;  %v816_v42 = vpack.c.bf16 %v188_v40, %v187_v39  ;;  %v189_v46 = vld [vmem:[%s1194_s1 + $0x220] sm:$0xff]  ;;  %v357_v19 = vld [vmem:[%s1194_s1 + $0x250] sm:$0xff]  ;;  %v664_v40 = vsub.s32 4, %v1098_v35 }
  0x27   :  { %v819_v50 = vpack.c.bf16 %v190_v47, %v189_v46  ;;  %v269_v2 = vld [vmem:[%s1194_s1 + $0x240] sm:$0xff]  ;;  %v513_v34 = vld [vmem:[%s1194_s1 + $0x290] sm:$0xff] }
  0x28   :  { %817 = vmatpush3.bf16.msra.mxu1 %v816_v42  ;;  %v360_v13 = vld [vmem:[%s1194_s1 + $0x280] sm:$0xff] }
  0x29   :  { %790 = vmatpush1.bf16.msra.mxu0 %v789_v62  ;;  %818 = vmatprep.subr.bf16.mxu1 %v871_v43  ;;  %v822_v14 = vpack.c.bf16 %v360_v13, %v359_v12  ;;  %v358_v20 = vld [vmem:[%s1194_s1 + $0x260] sm:$0xff] }
  0x2a   :  { %792 = vmatprep.subr.bf16.mxu0 %v791_v63  ;;  %v825_v21 = vpack.c.bf16 %v358_v20, %v357_v19  ;;  %v516_v24 = vld [vmem:[%s1194_s1 + $0x2c0] sm:$0xff] }
  0x2b   :  { %v514_v36 = vld [vmem:[%s1194_s1 + $0x2a0] sm:$0xff] }
  0x2c   :  { %820 = vmatpush3.bf16.msra.mxu1 %v819_v50  ;;  %v831_v38 = vpack.c.bf16 %v514_v36, %v513_v34 }
  0x2d   :  { %794 = vmatpush1.bf16.msra.mxu0 %v793_v4  ;;  %718 = vmatprep.subr.mxu1 %v875_v53  ;;  %v193_v4 = vsub.s32 1, %v1098_v35 }
  0x2e   :  { %796 = vmatprep.subr.bf16.mxu0 %v795_v5 }
  0x2f   :  { %v194_v5 = vrot.slane %v1104_v37, %v193_v4 }
  0x31   :  { %798 = vmatpush1.bf16.msra.mxu0 %v797_v10 }
  0x32   :  { %800 = vmatprep.subr.bf16.mxu0 %v799_v11 }
  0x35   :  { %802 = vmatpush1.bf16.msra.mxu0 %v801_v16  ;;  %v354_v16 = vrot.slane %v1104_v37, %v353_v15 }
  0x36   :  { %804 = vmatprep.subr.bf16.mxu0 %v803_v17 }
  0x39   :  { %806 = vmatpush1.bf16.msra.mxu0 %v805_v22 }
  0x3a   :  { %808 = vmatprep.subr.bf16.mxu0 %v807_v23  ;;  %v515_v23 = vld [vmem:[%s1194_s1 + $0x2b0] sm:$0xff]  ;;  %s847_s1 = scalar_lea.vmem %s675_s0, 128 }
  0x3b   :  { %v828_v25 = vpack.c.bf16 %v516_v24, %v515_v23  ;;  %p848_p0 = scmp.ne.s32.totalorder %s675_s0, %s847_s1  ;;  %p853_p2 = scmp.lt.s32.totalorder %s847_s1, %s847_s1 }
  0x3d   :  { %810 = vmatpush1.bf16.msra.mxu0 %v809_v28  ;;  %p854_p3 = por %p853_p2, %p852_p1 }
  0x3e   :  { %812 = vmatprep.subr.bf16.mxu0 %v811_v29  ;;  %v510_v29 = vrot.slane %v1104_v37, %v509_v26 }
  0x3f   :  { %p855_p4 = pnand %p854_p3, %p848_p0 }
  0x41   :  { %814 = vmatpush1.bf16.msra.mxu0 %v813_v32 }
  0x44   :  { %156 = vmatmul.mubr.f32.vlgmr.msra.gmra.mrb[0].mxu0 %v15_v33 }
 0x117   :  { %v157_v45 = vpop.f32.mrb[0].mxu0 }
 0x118   :  { %v158_v48 = vadd.f32 %v157_v45, %v86_v41  ;;  %v159_v49 = vpop.f32.mrb[1].mxu0 }
 0x119   :  { %v160_v52 = vadd.f32 %v159_v49, %v90_v44 }
 0x11a   :  { %v162_v51 = vmax.f32 %v158_v48, 0.0 }
 0x11b   :  { %v163_v54 = vmax.f32 %v160_v52, 0.0 }
 0x11c   :  { %173 = vrot.lane.b32.xlu1 %v162_v51, %s872_s19  ;;  %165 = vrot.lane.b32.xlu0 %v162_v51, %s873_s20 }
 0x120   :  { %179 = vrot.lane.b32.xlu1 %v163_v54, %s873_s20  ;;  %169 = vrot.lane.b32.xlu0 %v162_v51, %s876_s21 }
 0x124   :  { %183 = vrot.lane.b32.xlu0 %v163_v54, %s876_s21 }
 0x18e   :  { %v166_v55 = vpop.permute.xlu0 %165  ;;  %v174_v57 = vpop.permute.xlu1 %173 }
 0x18f   :  { %v168_v56 = vmax.f32 %v162_v51, %v166_v55 }
 0x192   :  { %v170_v58 = vpop.permute.xlu0 %169  ;;  %v180_v62 = vpop.permute.xlu1 %179 }
 0x193   :  { %v172_v59 = vmax.f32 %v168_v56, %v170_v58 }
 0x195   :  { %v176_v60 = vmax.f32 %v172_v59, %v174_v57 }
 0x196   :  { %v184_v0 = vpop.permute.xlu0 %183 }
 0x197   :  { %v177_v61 = vmax.f32 %v176_v60, %v163_v54 }
 0x199   :  { %v182_v63 = vmax.f32 %v177_v61, %v180_v62 }
 0x19b   :  { %v186_v1 = vmax.f32 %v182_v63, %v184_v0 }
 0x19d   :  { %716 = vmatmul.mubr.msk.f32.vlgmr.msra.gmra.mrb[0].mxu1 %vm195_vm1, %v186_v1 }
 0x19e   :  { %720 = vmatprep.mubr.msk.f32.mxu1 %vm874_vm0, %v875_v53  ;;  %719 = vmatpush3.msra.mxu1 %v269_v2 }
 0x19f   :  { %821 = vmatprep.subr.bf16.mxu1 %v871_v43 }
 0x270   :  { %v265_v6 = vpop.f32.mrb[0].mxu1 }
 0x271   :  { %v266_v7 = vadd.f32 %v265_v6, %v194_v5  ;;  %v717_v8 = vpop.f32.mrb[1].mxu1 }
 0x273   :  { %271 = vrot.lane.b32.xlu1 %v266_v7, %s878_s24 }
 0x2e5   :  { %v272_v9 = vpop.permute.xlu1 %271 }
 0x2e6   :  { %721 = vmatmul.mubr.msk.f32.vlgmr.msra.gmra.mrb[2].mxu1 %vm273_vm2, %v272_v9 }
 0x2e7   :  { %727 = vmatprep.mubr.msk.f32.mxu1 %vm874_vm0, %v875_v53  ;;  %823 = vmatpush3.bf16.msra.mxu1 %v822_v14 }
 0x2e8   :  { %824 = vmatprep.subr.bf16.mxu1 %v871_v43 }
 0x3b9   :  { %v342_v10 = vpop.f32.mrb[2].mxu1 }
 0x3ba   :  { %348 = vperm.xlu0 %842, %v342_v10   ;;  %v722_v11 = vpop.f32.mrb[3].mxu1 }
 0x439   :  { %v349_v17 = vpop.permute.xlu0 %348 }
 0x43a   :  { %v355_v18 = vadd.f32 %v354_v16, %v349_v17 }
 0x43c   :  { %843 = vtanh.f32 %v355_v18 }
 0x446   :  { %v844_v22 = vpop.eup %843 }
 0x447   :  { %728 = vmatmul.mubr.msk.f32.vlgmr.msra.gmra.mrb[4].mxu1 %vm361_vm3, %v844_v22 }
 0x448   :  { %826 = vmatpush3.bf16.msra.mxu1 %v825_v21  ;;  %734 = vmatprep.mubr.msk.f32.mxu1 %vm874_vm0, %v875_v53 }
 0x449   :  { %827 = vmatprep.subr.bf16.mxu1 %v871_v43 }
 0x44b   :  { %735 = vmatmul.mubr.msk.f32.vlgmr.msra.gmra.mrb[6].mxu1 %vm361_vm3, %v342_v10 }
 0x44c   :  { %741 = vmatprep.mubr.msk.f32.mxu1 %vm874_vm0, %v875_v53  ;;  %829 = vmatpush3.bf16.msra.mxu1 %v828_v25 }
 0x44d   :  { %830 = vmatprep.subr.bf16.mxu1 %v871_v43  ;;  %v665_v43 = vrot.slane %v1104_v37, %v664_v40 }
 0x51a   :  { %v431_v27 = vpop.f32.mrb[4].mxu1 }
 0x51b   :  { %v729_v28 = vpop.f32.mrb[5].mxu1 }
 0x51e   :  { %v503_v30 = vpop.f32.mrb[6].mxu1 }
 0x51f   :  { %v504_v31 = vadd.f32 %v503_v30, %v431_v27  ;;  %v736_v32 = vpop.f32.mrb[7].mxu1 }
 0x521   :  { %v511_v33 = vadd.f32 %v510_v29, %v504_v31 }
 0x523   :  { %845 = vtanh.f32 %v511_v33 }
 0x52d   :  { %v846_v39 = vpop.eup %845 }
 0x52e   :  { %742 = vmatmul.mubr.msk.f32.vlgmr.msra.gmra.mrb[8].mxu1 %vm361_vm3, %v846_v39 }
 0x52f   :  { %832 = vmatpush3.bf16.msra.mxu1 %v831_v38  ;;  %748 = vmatprep.mubr.msk.f32.mxu1 %vm874_vm0, %v875_v53 }
 0x532   :  { %749 = vmatmul.mubr.msk.f32.vlgmr.msra.gmra.mrb[10].mxu1 %vm361_vm3, %v266_v7 }
 0x601   :  { %v586_v41 = vpop.f32.mrb[8].mxu1 }
 0x602   :  { %v743_v42 = vpop.f32.mrb[9].mxu1 }
 0x605   :  { %v658_v44 = vpop.f32.mrb[10].mxu1 }
 0x606   :  { %v659_v45 = vadd.f32 %v658_v44, %v586_v41  ;;  %v750_v46 = vpop.f32.mrb[11].mxu1 }
 0x608   :  { %v666_v47 = vadd.f32 %v665_v43, %v659_v45 }
 0x60a   :  { %667 = vst.msk [vmem:[#allocation2] sm:$0xff] %vm361_vm3, %v666_v47 }
 0x60b   :  { %858 = shalt.err (!%p855_p4)
}
 0x60c   :  { %s859_s16 = scalar_lea.hbm %s1196_s3, 128 }
 0x60d   :  { %p860_p5 = scmp.ne.s32.totalorder %s1196_s3, %s859_s16  ;;  %p863_p6 = scmp.lt.u32.totalorder %s859_s16, %s1196_s3 }
 0x60f   :  { %p865_p7 = pnand %p863_p6, %p860_p5 }
 0x611   :  { %868 = shalt.err (!%p865_p7)
}
 0x612   :  { %677 = dma.vmem_to_hbm [thread:$0]  %s675_s0, 128, %s1196_s3, [#allocation3]  }
 0x613   :  { %869 = dma.done.wait [#allocation3], 128  }
 0x614   :  { %870 = vsyncadd [#allocation3], 4294967168 }
 0x615   :  { %681 = vsyncpa [#allocation3], 1 }

</bundles_post_ra>
